<compile_context>
chip_gen: v7x
topology: tpu7x:2x2x1
jax: 0.10.0
libtpu: 0.0.40
codegen_flags: <defaults>
</compile_context>

<pallas_src>
import jax
import jax.numpy as jnp
from jax.experimental import pallas as pl
from jax.experimental.pallas import tpu as pltpu


def _fam_kernel(x_ref, w_ref, b_ref, o_ref, acc_ref):
    # x_ref   : (B, TK)  bf16   flattened, K-tiled input slice
    # w_ref   : (TK, N)  bf16   folded classifier weight slice
    # b_ref   : (1, N)   f32    folded bias
    # o_ref   : (B, N)   f32    softmax probabilities
    # acc_ref : (B, N)   f32    VMEM logits accumulator (lives across K tiles)
    k = pl.program_id(0)

    @pl.when(k == 0)
    def _():
        acc_ref[...] = jnp.zeros_like(acc_ref)

    # model (partial): accumulate this K-slice's contribution on the MXU.
    acc_ref[...] += jnp.dot(
        x_ref[...], w_ref[...], preferred_element_type=jnp.float32
    )

    @pl.when(k == pl.num_programs(0) - 1)
    def _():
        # bias + postprocessor: numerically-stable softmax over classes.
        # Epilogue runs once -> exact f32 division (rows sum to 1 to f32 eps).
        logits = acc_ref[...] + b_ref[...]
        m = jnp.max(logits, axis=-1, keepdims=True)
        e = jnp.exp(logits - m)
        denom = jnp.sum(e, axis=-1, keepdims=True)
        o_ref[...] = (e / denom).astype(o_ref.dtype)


def fam_forward(x_nchw, mean_c, std_c, w, b, *, tk=512):
    """FamWrapper.forward: postprocessor(model(preprocessor(x))).

    x_nchw : (B, C, H, W) float32
    mean_c : (C,)  float32   per-channel mean   (preprocessor params)
    std_c  : (C,)  float32   per-channel std
    w      : (K, N) float32  K = C*H*W          (model params)
    b      : (N,)  float32
    returns: (B, N) float32 softmax probabilities
    """
    B, C, H, W = x_nchw.shape
    K = C * H * W
    N = w.shape[1]
    assert N % 128 == 0, "keep output lane dim a multiple of 128 (pad + mask otherwise)"

    # --- fold the affine preprocessor into the linear model (f32, host side) ---
    hw = H * W
    inv_std_k = jnp.repeat(1.0 / std_c, hw)                    # (K,)
    mean_k = jnp.repeat(mean_c, hw)                            # (K,)
    w_folded = w * inv_std_k[:, None]                          # (K, N) f32
    b_folded = (b - (mean_k * inv_std_k) @ w).reshape(1, N)    # (1, N) f32

    # --- low-precision streaming operands (accumulation stays f32 in-kernel) ---
    x_flat = x_nchw.reshape(B, K).astype(jnp.bfloat16)
    w_bf16 = w_folded.astype(jnp.bfloat16)

    # --- K (reduction) tiling ---
    tk = min(tk, K)
    assert K % tk == 0, "K must divide evenly by the K-tile size"
    kt = K // tk

    return pl.pallas_call(
        _fam_kernel,
        out_shape=jax.ShapeDtypeStruct((B, N), jnp.float32),
        grid=(kt,),
        in_specs=[
            pl.BlockSpec((B, tk), lambda k: (0, k)),   # x slice along K
            pl.BlockSpec((tk, N), lambda k: (k, 0)),   # W' slice along K (streamed)
            pl.BlockSpec((1, N), lambda k: (0, 0)),    # folded bias (resident)
        ],
        out_specs=pl.BlockSpec((B, N), lambda k: (0, 0)),  # resident across K
        scratch_shapes=[pltpu.VMEM((B, N), jnp.float32)],  # logits accumulator
        compiler_params=pltpu.CompilerParams(
            # K is a reduction axis (accumulator carried across it).
            # TODO(synk): when B or N grows, add a leading "parallel" axis
            # (tile B or N) so v7x's two TensorCores both get work.
            dimension_semantics=("arbitrary",),
            # Sized for the smallest VMEM target (v7x: 64 MiB physical).
            vmem_limit_bytes=32 * 1024 * 1024,
        ),
    )(x_flat, w_bf16, b_folded)


def fam_reference(x_nchw, mean_c, std_c, w, b):
    """Pure-JAX f32 reference of the same FamWrapper instantiation."""
    B, C, H, W = x_nchw.shape
    xn = (x_nchw - mean_c[None, :, None, None]) / std_c[None, :, None, None]
    logits = xn.reshape(B, -1) @ w + b[None, :]
    return jax.nn.softmax(logits, axis=-1)


if __name__ == "__main__":
    key = jax.random.PRNGKey(0)
    k_x, k_w, k_b, k_m, k_s = jax.random.split(key, 5)

    B, C, H, W = 2, 4, 16, 16         # NCHW conv-style input
    K = C * H * W                     # 1024 flattened features
    N = 128                           # classes (lane-aligned)

    x = jax.random.normal(k_x, (B, C, H, W), dtype=jnp.float32)

    # Deterministic synthetic parameters (shapes implied by the pipeline).
    mean_c = 0.1 * jax.random.normal(k_m, (C,), dtype=jnp.float32)
    std_c = 1.0 + 0.1 * jnp.abs(jax.random.normal(k_s, (C,), dtype=jnp.float32))
    w = 0.02 * jax.random.normal(k_w, (K, N), dtype=jnp.float32)
    b = 0.01 * jax.random.normal(k_b, (N,), dtype=jnp.float32)

    out = fam_forward(x, mean_c, std_c, w, b)
    out = jax.block_until_ready(out)

    ref = fam_reference(x, mean_c, std_c, w, b)
    assert out.shape == (B, N)
    # bf16 matmul operands -> bf16-level tolerance vs f32 reference.
    assert jnp.allclose(out, ref, atol=2e-3, rtol=2e-2), "mismatch vs reference"
    # Exact-division epilogue -> rows sum to 1 at f32 accuracy.
    assert jnp.allclose(jnp.sum(out, axis=-1), 1.0, atol=1e-3), "softmax rows must sum to ~1"

    print("KERNEL_OK")
</pallas_src>

<mosaic_0001>
module attributes {stable_mosaic.version = 11 : i64} {
  func.func @_fam_kernel(%arg0: i32, %arg1: memref<2x512xbf16, #tpu.memory_space<vmem>>, %arg2: memref<512x128xbf16, #tpu.memory_space<vmem>>, %arg3: memref<1x128xf32, #tpu.memory_space<vmem>>, %arg4: memref<2x128xf32, #tpu.memory_space<vmem>>, %arg5: memref<2x128xf32, #tpu.memory_space<vmem>>) attributes {dimension_semantics = [#tpu.dimension_semantics<arbitrary>], iteration_bounds = array<i64: 2>, scalar_prefetch = 0 : i64, scratch_operands = 1 : i64, tpu.core_type = #tpu.core_type<tc>, window_params = [{transform_indices = @transform_0, window_bounds = array<i64: 2, 512>}, {transform_indices = @transform_1, window_bounds = array<i64: 512, 128>}, {pipeline_mode = #tpu.pipeline_mode<synchronous>, transform_indices = @transform_2, window_bounds = array<i64: 1, 128>}, {pipeline_mode = #tpu.pipeline_mode<synchronous>, transform_indices = @transform_3, window_bounds = array<i64: 2, 128>}]} {
    %c0_i32 = arith.constant 0 : i32
    %0 = arith.cmpi eq, %arg0, %c0_i32 : i32
    %1 = arith.extui %0 : i1 to i32
    %c0_i32_0 = arith.constant 0 : i32
    %2 = arith.cmpi ne, %1, %c0_i32_0 : i32
    scf.if %2 {
      %cst_9 = arith.constant 0.000000e+00 : f32
      %12 = vector.broadcast %cst_9 : f32 to vector<2x128xf32>
      %c0_10 = arith.constant 0 : index
      %c0_11 = arith.constant 0 : index
      %13 = vector.load %arg5[%c0_10, %c0_11] : memref<2x128xf32, #tpu.memory_space<vmem>>, vector<2x128xf32>
      tpu.vector_store %arg5[%c0_10, %c0_11], %12 {strides = array<i32>} : memref<2x128xf32, #tpu.memory_space<vmem>>, vector<2x128xf32>,
    } else {
    }
    %c0 = arith.constant 0 : index
    %c0_1 = arith.constant 0 : index
    %3 = vector.load %arg5[%c0, %c0_1] : memref<2x128xf32, #tpu.memory_space<vmem>>, vector<2x128xf32>
    %c0_2 = arith.constant 0 : index
    %c0_3 = arith.constant 0 : index
    %4 = vector.load %arg1[%c0_2, %c0_3] : memref<2x512xbf16, #tpu.memory_space<vmem>>, vector<2x512xbf16>
    %c0_4 = arith.constant 0 : index
    %c0_5 = arith.constant 0 : index
    %5 = vector.load %arg2[%c0_4, %c0_5] : memref<512x128xbf16, #tpu.memory_space<vmem>>, vector<512x128xbf16>
    %cst = arith.constant dense<0.000000e+00> : vector<2x128xf32>
    %6 = tpu.matmul %4, %5, %cst {dimension_numbers = #tpu.dot_dimension_numbers<[1], [0], [0], [1], [0, 0, 1, 1], [], []>} : vector<2x512xbf16>, vector<512x128xbf16>, vector<2x128xf32> -> vector<2x128xf32>
    %7 = arith.addf %3, %6 : vector<2x128xf32>
    %c0_6 = arith.constant 0 : index
    %c0_7 = arith.constant 0 : index
    %8 = vector.load %arg5[%c0_6, %c0_7] : memref<2x128xf32, #tpu.memory_space<vmem>>, vector<2x128xf32>
    tpu.vector_store %arg5[%c0_6, %c0_7], %7 {strides = array<i32>} : memref<2x128xf32, #tpu.memory_space<vmem>>, vector<2x128xf32>,
    %c1_i32 = arith.constant 1 : i32
    %9 = arith.cmpi eq, %arg0, %c1_i32 : i32
    %10 = arith.extui %9 : i1 to i32
    %c0_i32_8 = arith.constant 0 : i32
    %11 = arith.cmpi ne, %10, %c0_i32_8 : i32
    scf.if %11 {
      %c0_9 = arith.constant 0 : index
      %c0_10 = arith.constant 0 : index
      %12 = vector.load %arg5[%c0_9, %c0_10] : memref<2x128xf32, #tpu.memory_space<vmem>>, vector<2x128xf32>
      %c0_11 = arith.constant 0 : index
      %c0_12 = arith.constant 0 : index
      %13 = vector.load %arg3[%c0_11, %c0_12] : memref<1x128xf32, #tpu.memory_space<vmem>>, vector<1x128xf32>
      %14 = vector.broadcast %13 : vector<1x128xf32> to vector<2x128xf32>
      %15 = arith.addf %12, %14 : vector<2x128xf32>
      %cst_13 = arith.constant dense<0xFF800000> : vector<2xf32>
      %16 = vector.multi_reduction <maximumf>, %15, %cst_13 [1] : vector<2x128xf32> to vector<2xf32>
      %17 = vector.shape_cast %16 : vector<2xf32> to vector<2x1xf32>
      %18 = vector.broadcast %17 : vector<2x1xf32> to vector<2x128xf32>
      %19 = arith.subf %15, %18 : vector<2x128xf32>
      %20 = math.exp %19 : vector<2x128xf32>
      %cst_14 = arith.constant dense<0.000000e+00> : vector<2xf32>
      %21 = vector.multi_reduction <add>, %20, %cst_14 [1] : vector<2x128xf32> to vector<2xf32>
      %22 = vector.shape_cast %21 : vector<2xf32> to vector<2x1xf32>
      %23 = vector.broadcast %22 : vector<2x1xf32> to vector<2x128xf32>
      %24 = arith.divf %20, %23 : vector<2x128xf32>
      %c0_15 = arith.constant 0 : index
      %c0_16 = arith.constant 0 : index
      %25 = vector.load %arg4[%c0_15, %c0_16] : memref<2x128xf32, #tpu.memory_space<vmem>>, vector<2x128xf32>
      tpu.vector_store %arg4[%c0_15, %c0_16], %24 {strides = array<i32>} : memref<2x128xf32, #tpu.memory_space<vmem>>, vector<2x128xf32>,
    } else {
    }
    return
  }
  func.func @transform_0(%arg0: i32) -> (i32, i32) {
    %c0_i32 = arith.constant 0 : i32
    %c0_i32_0 = arith.constant 0 : i32
    return %c0_i32, %arg0 : i32, i32
  }
  func.func @transform_1(%arg0: i32) -> (i32, i32) {
    %c0_i32 = arith.constant 0 : i32
    %c0_i32_0 = arith.constant 0 : i32
    return %arg0, %c0_i32 : i32, i32
  }
  func.func @transform_2(%arg0: i32) -> (i32, i32) {
    %c0_i32 = arith.constant 0 : i32
    %c0_i32_0 = arith.constant 0 : i32
    %c0_i32_1 = arith.constant 0 : i32
    return %c0_i32, %c0_i32_0 : i32, i32
  }
  func.func @transform_3(%arg0: i32) -> (i32, i32) {
    %c0_i32 = arith.constant 0 : i32
    %c0_i32_0 = arith.constant 0 : i32
    %c0_i32_1 = arith.constant 0 : i32
    return %c0_i32, %c0_i32_0 : i32, i32
  }
}

</mosaic_0001>

<bundles_post_ra>
// kernel: tpu_custom_call.1
= control target key start
LH: loop header
LB: loop body
LE: loop exit
PB: predicated region body
PF: predicated region fallthrough
CT: control target
= control target key end

     0   :  { %8 = vsyncpa [#allocation4], 0  ;;  %s1260_s0 = inlined_call_operand.hbm [shape: bf16[2,1024], index: 0, kind: input, shape index: {}]   ;;  %s1261_s1 = inlined_call_operand.hbm [shape: bf16[1024,128], index: 1, kind: input, shape index: {}]   ;;  %s1262_s2 = inlined_call_operand.vmem [shape: f32[1,128], index: 2, kind: input, shape index: {}]   ;;  %s1263_s3 = inlined_call_operand.hbm [shape: f32[2,128], index: 3, kind: output, shape index: {}]  }
   0x1   :  { %10 = vsyncpa [#allocation4 + $0x1], 0 }
   0x2   :  { %11 = vsyncpa [#allocation7], 0 }
   0x3   :  { %13 = vsyncpa [#allocation7 + $0x1], 0 }
   0x4   :  { %14 = vsyncpa [#allocation5], 0  ;;  %s1044_s12 = smov 0   ;;  %s1046_s13 = smov 0  }
   0x5   :  { %s1048_s14 = smov 0   ;;  %s1050_s15 = smov 0  }
   0x6 LB: > { %s1063_s16 = sadd.s32 4294967295, %s1015_s15   ;;  %s1066_s17 = sadd.s32 1, %s1015_s15   ;;  %s1015_s15 = sphi %s1050_s15, %s1274_s15   ;;  %s1011_s14 = sphi %s1048_s14, %s1273_s14   ;;  %s1007_s13 = sphi %s1046_s13, %s1272_s13   ;;  %s1003_s12 = sphi %s1044_s12, %s1271_s12  }
   0x7   : > { %s24_s18 = ssub.s32 %s1015_s15, %s1066_s17  ;;  %s27_s19 = sadd.s32 1, %s1011_s14 }
   0x8   : > { %p25_p0 = scmp.eq.s32.totalorder %s24_s18, 0  ;;  %p34_p1 = scmp.ne.s32.totalorder %s1011_s14, %s1007_s13 }
   0x9   : > { %p35_p2 = scmp.eq.s32.totalorder %s1015_s15, 0  ;;  %p40_p3 = scmp.ne.s32.totalorder %s1007_s13, %s1003_s12 }
   0xa   : > { %s1076_s20 = scalar_select %p25_p0, %s1011_s14, %s27_s19  }
   0xb   : > { %p36_p4 = por %p35_p2, %p34_p1  ;;  %p41_p5 = scmp.eq.s32.totalorder %s1063_s16, 0 }
   0xc   : > { %p811_p6 = scmp.lt.s32.totalorder %s1015_s15, 2  ;;  %s1085_s22 = sand.u32 1, %s1011_s14  }
   0xd   : > { %p1080_p7 = por %p41_p5, %p40_p3  ;;  %s701_s23 = sshll.u32 %s1085_s22, 2 }
   0xe   : > { %s750_s24 = sshll.u32 %s1015_s15, 6  ;;  %s139_s28 = scalar_lea.vmem [#allocation3], %s701_s23 }
   0xf   : > { %s1265_s21 = scalar_select %p1080_p7, 1, 0 }
  0x10   : > { %s1092_s27 = scalar_lea.hbm %s1260_s0, %s750_s24  ;;  %s147_s29 = sshll.u32 %s139_s28, 4  ;;  %s1094_s29 = int_to_ptr.vmem [resolvable:$true] %s147_s29 }
  0x11   : > { %p1096_p8 = pnand %p811_p6, %p36_p4  ;;  %s136_s4 = scalar_lea.sflag [#allocation4], %s1085_s22 }
  0x12   : > { %s887_s5 = scalar_lea.hbm %s1092_s27, 64  ;;  %s892_s8 = scalar_lea.hbm %s1260_s0, 128 }
  0x13   : > { %p888_p11 = scmp.ne.s32.totalorder %s1092_s27, %s887_s5  ;;  %p889_p12 = pneg %p1096_p8 }
  0x14   : > { %p893_p1 = scmp.lt.u32.totalorder %s1092_s27, %s1260_s0  ;;  %p894_p2 = scmp.lt.u32.totalorder %s892_s8, %s887_s5 }
  0x15   : > { %p890_p13 = pnand %p889_p12, %p888_p11  ;;  %p896_p4 = scmp.lt.u32.totalorder %s887_s5, %s1092_s27 }
  0x16   : > { %p895_p3 = por %p894_p2, %p893_p1 }
  0x17   : > { %p891_p0 = pneg %p890_p13 }
  0x18   : > { %p897_p5 = por %p896_p4, %p895_p3 }
  0x1a   : > { %p898_p6 = pnand %p897_p5, %p891_p0 }
  0x1c   : > { %901 = shalt.err (!%p898_p6)
}
  0x1d   : > { %s902_s11 = scalar_lea.vmem %s1094_s29, 64  ;;  %s1017_s12 = smov [#allocation3]  }
  0x1e   : > { %p903_p11 = scmp.ne.s32.totalorder %s1094_s29, %s902_s11  ;;  %s907_s18 = sshll.u32 %s1017_s12, 4  ;;  %s908_s18 = int_to_ptr.vmem [resolvable:$false] %s907_s18 }
  0x1f   : > { %s909_s19 = scalar_lea.vmem %s908_s18, 128  ;;  %p910_p10 = scmp.lt.s32.totalorder %s1094_s29, %s908_s18 }
  0x20   : > { %p905_p13 = pnand %p903_p11, %p889_p12  ;;  %p911_p1 = scmp.lt.s32.totalorder %s909_s19, %s902_s11 }
  0x22   : > { %p906_p9 = pneg %p905_p13  ;;  %p912_p2 = por %p911_p1, %p910_p10 }
  0x24   : > { %p913_p3 = pnand %p912_p2, %p906_p9 }
  0x26   : > { %916 = shalt.err (!%p913_p3)
}
  0x27   : > { %807 = dma.hbm_to_vmem [thread:$0]  (!%p1096_p8), %s1092_s27, 64, %s1094_s29, %s136_s4  }
  0x28   : > { %p1267_p0 = scmp.lt.s32.totalorder %s1015_s15, 3  ;;  %p1268_p4 = scmp.ge.s32.totalorder %s1015_s15, 1 }
  0x29   : > { %s704_s24 = sshll.u32 %s1085_s22, 8  ;;  %s751_s25 = sshll.u32 %s1015_s15, 12 }
  0x2a   : > { %p1132_p5 = pnand %p1268_p4, %p1267_p0  ;;  %s1141_s5 = scalar_lea.hbm %s1261_s1, %s751_s25 }
  0x2b   : > { %s158_s6 = scalar_lea.vmem [#allocation6], %s704_s24  ;;  %s155_s27 = scalar_lea.sflag [#allocation7], %s1085_s22 }
  0x2c   : > { %s165_s7 = sshll.u32 %s158_s6, 4  ;;  %s917_s29 = scalar_lea.hbm %s1141_s5, 4096  ;;  %s1143_s7 = int_to_ptr.vmem [resolvable:$true] %s165_s7 }
  0x2d   : > { %p918_p9 = scmp.ne.s32.totalorder %s1141_s5, %s917_s29  ;;  %s922_s8 = scalar_lea.hbm %s1261_s1, 8192 }
  0x2e   : > { %p923_p11 = scmp.lt.u32.totalorder %s1141_s5, %s1261_s1  ;;  %p924_p13 = scmp.lt.u32.totalorder %s922_s8, %s917_s29 }
  0x2f   : > { %p920_p10 = pnand %p918_p9, %p889_p12  ;;  %p926_p2 = scmp.lt.u32.totalorder %s917_s29, %s1141_s5 }
  0x30   : > { %p925_p1 = por %p924_p13, %p923_p11 }
  0x31   : > { %p921_p6 = pneg %p920_p10 }
  0x32   : > { %p927_p3 = por %p926_p2, %p925_p1 }
  0x34   : > { %p928_p0 = pnand %p927_p3, %p921_p6 }
  0x36   : > { %931 = shalt.err (!%p928_p0)
}
  0x37   : > { %s932_s11 = scalar_lea.vmem %s1143_s7, 4096  ;;  %s1018_s12 = smov [#allocation6]  }
  0x38   : > { %p933_p4 = scmp.ne.s32.totalorder %s1143_s7, %s932_s11  ;;  %s937_s18 = sshll.u32 %s1018_s12, 4  ;;  %s938_s18 = int_to_ptr.vmem [resolvable:$false] %s937_s18 }
  0x39   : > { %s939_s19 = scalar_lea.vmem %s938_s18, 8192  ;;  %p940_p7 = scmp.lt.s32.totalorder %s1143_s7, %s938_s18 }
  0x3a   : > { %p935_p9 = pnand %p933_p4, %p889_p12  ;;  %p941_p11 = scmp.lt.s32.totalorder %s939_s19, %s932_s11 }
  0x3c   : > { %p936_p10 = pneg %p935_p9  ;;  %p942_p13 = por %p941_p11, %p940_p7 }
  0x3e   : > { %p943_p1 = pnand %p942_p13, %p936_p10 }
  0x40   : > { %946 = shalt.err (!%p943_p1)
}
  0x41   : > { %s1019_s24 = smov 64   ;;  %s1020_s25 = smov 4  }
  0x42   : > { %810 = dma.hbm_to_vmem [thread:$0]  (!%p1096_p8), %s1141_s5, 4096, %s1143_s7, %s155_s27, %s1019_s24, %s1019_s24, %s1020_s25  }
  0x43   : > { %177 = sbr.rel (%p1132_p5) target bundleno = 691 (0x2b3), region = 32  ;;  %s179_s26 = sand.u32 (!%p1132_p5), 1, %s1007_s13  }
  0x44   : > { %s708_s28 = sshll.u32 (!%p1132_p5), %s179_s26, 2  ;;  %s180_s6 = scalar_lea.sflag (!%p1132_p5), [#allocation4], %s179_s26 }
  0x45   : > { %s1174_s29 = scalar_lea.vmem (!%p1132_p5), [#allocation3], %s708_s28  ;;  %p1270_p7 = scmp.ne.s32.totalorder (!%p1132_p5), %s1265_s21, 0 }
  0x4a   : > { %990 = dma.done.wait (%p1270_p7), %s180_s6, 64  }
  0x4b   : > { %992 = vsyncadd (%p1270_p7), %s180_s6, 4294967232  ;;  %s709_s15 = sshll.u32 %s179_s26, 8  ;;  %s189_s30 = scalar_lea.sflag [#allocation7], %s179_s26 }
  0x4c   : > { %s1180_s22 = scalar_lea.vmem [#allocation6], %s709_s15 }
  0x4d   : > { %994 = dma.done.wait (%p1270_p7), %s189_s30, 4096  }
  0x4e   : > { %996 = vsyncadd (%p1270_p7), %s189_s30, 4294963200  ;;  %p710_p8 = scmp.ne.s32.totalorder %s1063_s16, 0 }
  0x4f   : > { %v1021_v0 = vmov (!%p710_p8), 0.0  }
  0x50   : > { %221 = sbr.rel (%p710_p8) target bundleno = 87 (0x57), region = 44  ;;  %222 = vst [vmem:[#allocation2] sm:$0x3] (!%p710_p8), %v1021_v0 }
  0x57 PF: > { %v851_v1 = vld [vmem:[%s1180_s22 + $0x40] sm:$0xff]   ;;  %v855_v5 = vld [vmem:[%s1180_s22 + $0x48] sm:$0xff]   ;;  %v859_v9 = vld [vmem:[%s1180_s22 + $0x50] sm:$0xff]   ;;  %v301_v31 = vlaneseq  ;;  %v1022_v35 = vmov 1966171168   ;;  %p744_p12 = scmp.ne.s32.totalorder %s1063_s16, 1 }
  0x58   : > { %v852_v2 = vld [vmem:[%s1180_s22 + $0xc0] sm:$0xff]   ;;  %752 = vmatprep.subr.bf16.mxu0 %v851_v1  ;;  %v856_v6 = vld [vmem:[%s1180_s22 + $0xc8] sm:$0xff]   ;;  %v860_v10 = vld [vmem:[%s1180_s22 + $0xd0] sm:$0xff]   ;;  %v299_v36 = vunpack.c.l.s4 %v1022_v35  ;;  %vm605_vm0 = vcmask (!%p744_p12), 1041408  }
  0x59   : > { %v853_v3 = vld [vmem:[%s1180_s22] sm:$0xff]   ;;  %774 = vmatprep.subr.bf16.mxu1 %v852_v2  ;;  %v857_v7 = vld [vmem:[%s1180_s22 + $0x8] sm:$0xff]   ;;  %v861_v11 = vld [vmem:[%s1180_s22 + $0x10] sm:$0xff]   ;;  %v302_v37 = vshrl.u32 %v301_v31, 7 }
  0x5a   : > { %v854_v4 = vld [vmem:[%s1180_s22 + $0x80] sm:$0xff]   ;;  %753 = vmatpush3.bf16.msra.mxu0 %v853_v3  ;;  %v858_v8 = vld [vmem:[%s1180_s22 + $0x88] sm:$0xff]   ;;  %v862_v12 = vld [vmem:[%s1180_s22 + $0x90] sm:$0xff]   ;;  %v300_v39 = vunpack.c.0.s8 %v299_v36 }
  0x5b   : > { %775 = vmatpush3.bf16.msra.mxu1 %v854_v4  ;;  %754 = vmatprep.subr.bf16.mxu0 %v855_v5  ;;  %v863_v13 = vld [vmem:[%s1180_s22 + $0x58] sm:$0xff]   ;;  %v867_v17 = vld [vmem:[%s1180_s22 + $0x60] sm:$0xff]   ;;  %v871_v21 = vld [vmem:[%s1180_s22 + $0x68] sm:$0xff]  }
  0x5c   : > { %776 = vmatprep.subr.bf16.mxu1 %v856_v6  ;;  %v864_v14 = vld [vmem:[%s1180_s22 + $0xd8] sm:$0xff]   ;;  %v868_v18 = vld [vmem:[%s1180_s22 + $0xe0] sm:$0xff]   ;;  %v872_v22 = vld [vmem:[%s1180_s22 + $0xe8] sm:$0xff]   ;;  %v303_v40 = vsub.s32 %v300_v39, %v302_v37 }
  0x5d   : > { %v865_v15 = vld [vmem:[%s1180_s22 + $0x18] sm:$0xff]   ;;  %v869_v19 = vld [vmem:[%s1180_s22 + $0x20] sm:$0xff]   ;;  %v873_v23 = vld [vmem:[%s1180_s22 + $0x28] sm:$0xff]  }
  0x5e   : > { %755 = vmatpush3.bf16.msra.mxu0 %v857_v7  ;;  %v866_v16 = vld [vmem:[%s1180_s22 + $0x98] sm:$0xff]   ;;  %v870_v20 = vld [vmem:[%s1180_s22 + $0xa0] sm:$0xff]   ;;  %v874_v24 = vld [vmem:[%s1180_s22 + $0xa8] sm:$0xff]  }
  0x5f   : > { %777 = vmatpush3.bf16.msra.mxu1 %v858_v8  ;;  %756 = vmatprep.subr.bf16.mxu0 %v859_v9  ;;  %v875_v25 = vld [vmem:[%s1180_s22 + $0x70] sm:$0xff]   ;;  %v879_v29 = vld [vmem:[%s1180_s22 + $0x78] sm:$0xff]  }
  0x60   : > { %778 = vmatprep.subr.bf16.mxu1 %v860_v10  ;;  %v876_v26 = vld [vmem:[%s1180_s22 + $0xf0] sm:$0xff]   ;;  %v880_v30 = vld [vmem:[%s1180_s22 + $0xf8] sm:$0xff]  }
  0x61   : > { %v877_v27 = vld [vmem:[%s1180_s22 + $0x30] sm:$0xff]   ;;  %v881_v32 = vld [vmem:[%s1180_s22 + $0x38] sm:$0xff]  }
  0x62   : > { %757 = vmatpush3.bf16.msra.mxu0 %v861_v11  ;;  %v878_v28 = vld [vmem:[%s1180_s22 + $0xb0] sm:$0xff]   ;;  %v882_v33 = vld [vmem:[%s1180_s22 + $0xb8] sm:$0xff]  }
  0x63   : > { %779 = vmatpush3.bf16.msra.mxu1 %v862_v12  ;;  %758 = vmatprep.subr.bf16.mxu0 %v863_v13  ;;  %v711_v34 = vld.sshfl [vmem:[%s1174_s29] sm:$0x33 pattern:$0x75316420]  ;;  %v223_v54 = vld [vmem:[#allocation2] sm:$0x3] }
  0x64   : > { %780 = vmatprep.subr.bf16.mxu1 %v864_v14  ;;  %v297_v38 = vcombine.high %v711_v34, %v711_v34  ;;  %v304_v42 = vrot.slane %v711_v34, %v303_v40  ;;  %v745_v59 = vld [vmem:[%s1262_s2] ss:$0 sm:$0xff] (!%p744_p12) }
  0x66   : > { %759 = vmatpush3.bf16.msra.mxu0 %v865_v15  ;;  %v311_v41 = vrot.slane %v297_v38, %v303_v40  ;;  %v312_v44 = vcombine.high %v304_v42, %v304_v42 }
  0x67   : > { %781 = vmatpush3.bf16.msra.mxu1 %v866_v16  ;;  %760 = vmatprep.subr.bf16.mxu0 %v867_v17 }
  0x68   : > { %782 = vmatprep.subr.bf16.mxu1 %v868_v18  ;;  %542 = vmatprep.mubr.bf16.mxu0 %v311_v41  ;;  %v313_v43 = vcombine.high %v311_v41, %v311_v41 }
  0x6a   : > { %761 = vmatpush3.bf16.msra.mxu0 %v869_v19  ;;  %582 = vmatprep.mubr.bf16.mxu1 %v313_v43 }
  0x6b   : > { %783 = vmatpush3.bf16.msra.mxu1 %v870_v20  ;;  %762 = vmatprep.subr.bf16.mxu0 %v871_v21 }
  0x6c   : > { %784 = vmatprep.subr.bf16.mxu1 %v872_v22 }
  0x6e   : > { %763 = vmatpush3.bf16.msra.mxu0 %v873_v23 }
  0x6f   : > { %785 = vmatpush3.bf16.msra.mxu1 %v874_v24  ;;  %764 = vmatprep.subr.bf16.mxu0 %v875_v25 }
  0x70   : > { %786 = vmatprep.subr.bf16.mxu1 %v876_v26 }
  0x72   : > { %765 = vmatpush3.bf16.msra.mxu0 %v877_v27 }
  0x73   : > { %787 = vmatpush3.bf16.msra.mxu1 %v878_v28  ;;  %766 = vmatprep.subr.bf16.mxu0 %v879_v29 }
  0x74   : > { %788 = vmatprep.subr.bf16.mxu1 %v880_v30 }
  0x76   : > { %767 = vmatpush3.bf16.msra.mxu0 %v881_v32 }
  0x77   : > { %789 = vmatpush3.bf16.msra.mxu1 %v882_v33 }
  0x79   : > { %543 = vmatmul.mubr.bf16.vlgmr.msra.gmra.mrb[0].mxu0 %v304_v42 }
  0x7a   : > { %583 = vmatmul.mubr.bf16.vlgmr.msra.gmra.mrb[0].mxu1 %v312_v44 }
 0x14c   : > { %v768_v45 = vpop.f32.mrb[0].mxu0 }
 0x14d   : > { %v769_v46 = vpop.f32.mrb[1].mxu0  ;;  %v790_v47 = vpop.f32.mrb[0].mxu1 }
 0x14e   : > { %v770_v48 = vadd.f32 %v769_v46, %v768_v45  ;;  %v771_v49 = vpop.f32.mrb[2].mxu0  ;;  %v791_v50 = vpop.f32.mrb[1].mxu1 }
 0x14f   : > { %v772_v51 = vpop.f32.mrb[3].mxu0  ;;  %v792_v52 = vadd.f32 %v791_v50, %v790_v47  ;;  %v793_v53 = vpop.f32.mrb[2].mxu1  ;;  %595 = sbr.rel (%p744_p12) target bundleno = 666 (0x29a), region = 48 }
 0x150   : > { %v794_v55 = vpop.f32.mrb[3].mxu1 }
 0x151   : > { %v585_v56 = vadd.f32 %v792_v52, %v770_v48 }
 0x153   : > { %v590_v57 = vadd.f32 %v585_v56, %v223_v54 }
 0x155   : > { %591 = vst [vmem:[#allocation2] sm:$0x3] %v590_v57 }
 0x15c   : > { %v596_v58 = vld [vmem:[#allocation2] sm:$0x3] }
 0x15d   : > { %v604_v60 = vadd.f32 %v745_v59, %v596_v58 }
 0x15f   : > { %v606_v61 = vsel %vm605_vm0, %v604_v60, -inf }
 0x160   : > { %607 = vmax.xlane.f32.xlu0 %v606_v61 }
 0x1ed   : > { %v608_v62 = vpop.xlane.xlu0 %607 }
 0x1ee   : > { %v609_v63 = vsub.f32 %v604_v60, %v608_v62 }
 0x1f0   : > { %v610_v0 = vmul.f32 1.442695, %v609_v63 }
 0x1f2   : > { %883 = vpow2.f32 %v610_v0 }
 0x1fc   : > { %v884_v1 = vpop.eup %883 }
 0x1fd   : > { %v612_v2 = vsel %vm605_vm0, %v884_v1, 0.0 }
 0x1fe   : > { %613 = vadd.xlane.f32.xlu0 %v612_v2 }
 0x28b   : > { %v614_v3 = vpop.xlane.xlu0 %613 }
 0x28c   : > { %885 = vrcp.f32 %v614_v3 }
 0x296   : > { %v886_v4 = vpop.eup %885 }
 0x297   : > { %v616_v5 = vmul.f32 %v886_v4, %v884_v1 }
 0x299   : > { %617 = vst [vmem:[#allocation8] sm:$0x3] %v616_v5 }
 0x29a PF: > { %p812_p5 = scmp.eq.s32.totalorder %s1063_s16, 1  ;;  %s1023_s5 = smov [#allocation8]  }
 0x29b   : > { %s625_s7 = sshll.u32 %s1023_s5, 4  ;;  %s626_s7 = int_to_ptr.vmem [resolvable:$true] %s625_s7 }
 0x29c   : > { %s947_s27 = scalar_lea.vmem %s626_s7, 32  ;;  %p954_p0 = scmp.lt.s32.totalorder %s626_s7, %s626_s7 }
 0x29d   : > { %p948_p6 = scmp.ne.s32.totalorder %s626_s7, %s947_s27  ;;  %p955_p4 = scmp.lt.s32.totalorder %s947_s27, %s947_s27 }
 0x29f   : > { %p949_p2 = pnand %p948_p6, %p812_p5  ;;  %p956_p9 = por %p955_p4, %p954_p0 }
 0x2a1   : > { %p950_p3 = pneg %p949_p2 }
 0x2a3   : > { %p957_p10 = pnand %p956_p9, %p950_p3 }
 0x2a5   : > { %960 = shalt.err (!%p957_p10)
}
 0x2a6   : > { %s961_s9 = scalar_lea.hbm %s1263_s3, 32 }
 0x2a7   : > { %p962_p11 = scmp.ne.s32.totalorder %s1263_s3, %s961_s9  ;;  %p967_p7 = scmp.lt.u32.totalorder %s961_s9, %s1263_s3 }
 0x2a9   : > { %p963_p13 = pnand %p962_p11, %p812_p5 }
 0x2ab   : > { %p964_p1 = pneg %p963_p13 }
 0x2ad   : > { %p969_p8 = pnand %p967_p7, %p964_p1 }
 0x2af   : > { %972 = shalt.err (!%p969_p8)
}
 0x2b0   : > { %801 = dma.vmem_to_hbm [thread:$0]  (%p812_p5), %s626_s7, 32, %s1263_s3, [#allocation5]  }
 0x2b1   : > { %998 = dma.done.wait (%p812_p5), [#allocation5], 32  }
 0x2b2   : > { %1000 = vsyncadd (%p812_p5), [#allocation5], 4294967264 }
 0x2b3 PF: > { %p17_p12 = scmp.ge.s32.totalorder %s1066_s17, 4   ;;  %s1271_s12 = smov %s1007_s13 }
 0x2b4   : > { %s1272_s13 = smov %s1011_s14  ;;  %s1273_s14 = smov %s1076_s20 }
 0x2b5   : > { %s1274_s15 = smov %s1066_s17  ;;  %19 = sbr.rel (!%p17_p12) target bundleno = 6 (0x6), region = 90 }
 0x2bc   :  { %638 = vsyncpa [#allocation4], 1 }
 0x2bd   :  { %640 = vsyncpa [#allocation4 + $0x1], 1 }
 0x2be   :  { %641 = vsyncpa [#allocation7], 1 }
 0x2bf   :  { %643 = vsyncpa [#allocation7 + $0x1], 1 }
 0x2c0   :  { %644 = vsyncpa [#allocation5], 1 }
 0x2c1   :  { %646 = vsyncpa [#allocation5 + $0x1], 1 }

</bundles_post_ra>
